<compile_context>
chip_gen: v7x
topology: tpu7x:2x2x1
jax: 0.10.0
libtpu: 0.0.40
codegen_flags: <defaults>
</compile_context>

<pallas_src>
import math

import jax
import jax.numpy as jnp
from jax import lax
from jax.experimental import pallas as pl
from jax.experimental.pallas import tpu as pltpu

LN_EPS = 1e-5  # PyTorch nn.LayerNorm default eps

# Row indices of the packed (6, H) parameter-vector array.
_BQ, _GQ, _BETAQ, _BK, _GK, _BETAK = range(6)


def _attention_kernel(q_ref, k_ref, v_ref, qm_ref, km_ref, w_ref, vec_ref,
                      o_ref):
    vecs = vec_ref[...]                                     # (6, H) f32

    def linear_ln(x_ref, wT, b_row, g_row, beta_row):
        # nn.Dropout(p=0.0) is the identity -> omitted.
        # Linear: y = x @ W^T + b.  W^T is pre-packed (bf16, natural (K,N)
        # MXU layout) -> standard contraction, no in-kernel transpose.
        y = lax.dot_general(x_ref[...].astype(jnp.bfloat16), wT,
                            (((1,), (0,)), ((), ())),
                            preferred_element_type=jnp.float32) + b_row
        # Two-pass LayerNorm statistics (avoids E[y^2]-E[y]^2 cancellation).
        mu = jnp.mean(y, axis=-1, keepdims=True)
        yc = y - mu
        var = jnp.mean(yc * yc, axis=-1, keepdims=True)
        return yc * lax.rsqrt(var + LN_EPS) * g_row + beta_row

    # 1/sqrt(H) is already folded into the packed q-path gamma/beta.
    qn = linear_ln(q_ref, w_ref[0], vecs[_BQ:_BQ + 1],
                   vecs[_GQ:_GQ + 1], vecs[_BETAQ:_BETAQ + 1])   # (QB, H)
    kn = linear_ln(k_ref, w_ref[1], vecs[_BK:_BK + 1],
                   vecs[_GK:_GK + 1], vecs[_BETAK:_BETAK + 1])   # (KB, H)

    # Fused block-diagonal scores over all batches at once: (QB, KB) f32.
    s = lax.dot_general(qn.astype(jnp.bfloat16), kn.astype(jnp.bfloat16),
                        (((1,), (1,)), ((), ())),
                        preferred_element_type=jnp.float32)

    # invalid = cross-batch OR query-padded OR key-padded (single compare).
    invalid = qm_ref[...] != km_ref[...]                     # (QB, KB) bool

    # Reference fills masked scores with the GLOBAL scores.min() before the
    # row max.  Any fill <= every valid score leaves the row max unchanged
    # (and fully-masked rows yield a zero context either way), so the min
    # over the fused matrix (a superset of the reference's entries) is
    # output-equivalent.
    gmin = jnp.min(s)
    kmax = jnp.max(jnp.where(invalid, gmin, s), axis=-1, keepdims=True)
    # Reference subtracts the row max twice (scores -= k; exp(scores - k));
    # reproduced as ONE subtract of the pre-doubled row max.  NOTE: exp can
    # overflow when kmax is strongly negative -- matches the reference.
    e = jnp.where(invalid, 0.0, jnp.exp(s - (kmax + kmax)))
    denom = jnp.sum(e, axis=-1, keepdims=True) + 0.001
    attn = e * pl.reciprocal(denom, approx=True)

    # Block-diagonal attn @ stacked V == per-batch attn @ V (off-diagonal
    # attention weights are exactly zero).
    ctx = jnp.dot(attn.astype(jnp.bfloat16),
                  v_ref[...].astype(jnp.bfloat16),
                  preferred_element_type=jnp.float32)        # (QB, H)
    o_ref[...] = ctx.astype(o_ref.dtype)                     # one full store


def pack_params(params, hidden_size):
    """One-time packing (hoisted out of the per-call path):
      * weights -> (2, H, H) holding W^T in bf16 (natural MXU layout),
      * bias / gamma / beta vectors -> (6, H) f32, with 1/sqrt(H) folded into
        the q-path gamma/beta (removes the per-score scaling)."""
    inv_factor = 1.0 / math.sqrt(float(hidden_size))
    w_packed = jnp.stack([params['wq'].T, params['wk'].T]).astype(jnp.bfloat16)
    vec_packed = jnp.stack([
        params['bq'],
        params['gq'] * inv_factor,
        params['betaq'] * inv_factor,
        params['bk'],
        params['gk'],
        params['betak'],
    ]).astype(jnp.float32)
    return w_packed, vec_packed


def attention_forward(query, key, value, query_mask, key_mask,
                      w_packed, vec_packed):
    """query: (Q,B,H) f32, key/value: (K,B,H) f32, masks: (Q,B)/(K,B) bool.
    Returns context: (Q,B,H) f32 (same layout as the PyTorch module).

    API contract note: matmuls use bf16 MXU inputs with f32 accumulation and
    the softmax denominator uses an approximate reciprocal, so small
    deviations from a pure-f32 reference are expected."""
    Q, B, H = query.shape
    K = key.shape[0]

    # Free row-major reshapes to lane-friendly 2-D slabs (no transposes).
    q2 = query.reshape(Q * B, H)
    k2 = key.reshape(K * B, H)
    v2 = value.reshape(K * B, H)

    # Encode (validity, batch) in one int: valid -> batch id, padded query
    # -> -1, padded key -> -2.  A single != in the kernel then yields the
    # combined cross-batch / padding mask.
    batch_ids = jnp.arange(B, dtype=jnp.int32)
    qm_enc = jnp.where(query_mask, batch_ids[None, :], -1).reshape(Q * B, 1)
    km_enc = jnp.where(key_mask, batch_ids[None, :], -2).reshape(1, K * B)

    vspec = pl.BlockSpec(memory_space=pltpu.MemorySpace.VMEM)

    flops = (2 * (Q + K) * B * H * H          # projections
             + 2 * (Q * B) * (K * B) * H      # fused QK^T
             + 2 * (Q * B) * (K * B) * H)     # fused attn @ V
    bytes_accessed = (4 * (q2.size + k2.size + v2.size + qm_enc.size
                           + km_enc.size + vec_packed.size + Q * B * H)
                      + 2 * w_packed.size)

    out2 = pl.pallas_call(
        _attention_kernel,
        out_shape=jax.ShapeDtypeStruct((Q * B, H), jnp.float32),
        in_specs=[vspec] * 7,
        out_specs=vspec,
        cost_estimate=pl.CostEstimate(
            flops=flops,
            transcendentals=(Q * B) * (K * B) + Q * B,
            bytes_accessed=bytes_accessed),
        # Gridless: the whole problem is VMEM resident at these shapes.  When
        # shapes grow, add a ("parallel", ...) grid over (B, Q-tiles) (v7x has
        # two TensorCores) and K-tile before the (QB, KB) score slab hits the
        # VMEM ceiling (64 MiB on v7x).
    )(q2, k2, v2, qm_enc, km_enc, w_packed, vec_packed)

    return out2.reshape(Q, B, H)


def _reference_forward(query, key, value, query_mask, key_mask, params):
    """Pure-JAX (f32) mirror of the PyTorch forward, for validation."""
    H = query.shape[-1]
    factor = math.sqrt(float(H))

    def lin_ln(x, w, b, g, beta):
        y = x @ w.T + b
        mu = jnp.mean(y, axis=-1, keepdims=True)
        var = jnp.mean((y - mu) ** 2, axis=-1, keepdims=True)
        return (y - mu) / jnp.sqrt(var + LN_EPS) * g + beta

    q = lin_ln(query, params['wq'], params['bq'], params['gq'], params['betaq'])
    k = lin_ln(key, params['wk'], params['bk'], params['gk'], params['betak'])
    q_ = jnp.transpose(q, (1, 0, 2))
    k_ = jnp.transpose(k, (1, 2, 0))
    v_ = jnp.transpose(value, (1, 0, 2))
    scores = jnp.matmul(q_, k_) / factor
    km_ = jnp.transpose(key_mask, (1, 0))[:, None, :]
    qm_ = jnp.transpose(query_mask, (1, 0))[:, :, None]
    mask = ~(qm_ & km_)
    kmax = jnp.max(jnp.where(mask, jnp.min(scores), scores), axis=-1,
                   keepdims=True)
    scores = scores - kmax
    exp_scores = jnp.where(mask, 0.0, jnp.exp(scores - kmax))
    attn = exp_scores / (jnp.sum(exp_scores, axis=-1, keepdims=True) + 0.001)
    return jnp.transpose(jnp.matmul(attn, v_), (1, 0, 2))


if __name__ == "__main__":
    Q, K, B, H = 8, 8, 2, 32

    root = jax.random.PRNGKey(0)
    kq, kk, kv, kwq, kbq, kwk, kbk = jax.random.split(root, 7)

    query = jax.random.normal(kq, (Q, B, H), dtype=jnp.float32)
    key = jax.random.normal(kk, (K, B, H), dtype=jnp.float32)
    value = jax.random.normal(kv, (K, B, H), dtype=jnp.float32)

    # Deterministic masks: per-batch valid lengths.
    q_lens = jnp.array([Q, 6], dtype=jnp.int32)
    k_lens = jnp.array([K, 5], dtype=jnp.int32)
    query_mask = (jnp.arange(Q)[:, None] < q_lens[None, :])   # (Q, B) bool
    key_mask = (jnp.arange(K)[:, None] < k_lens[None, :])     # (K, B) bool

    # Deterministic parameter init (LayerNorm default gamma=1, beta=0).
    params = {
        'wq': 0.1 * jax.random.normal(kwq, (H, H), dtype=jnp.float32),
        'bq': 0.01 * jax.random.normal(kbq, (H,), dtype=jnp.float32),
        'gq': jnp.ones((H,), dtype=jnp.float32),
        'betaq': jnp.zeros((H,), dtype=jnp.float32),
        'wk': 0.1 * jax.random.normal(kwk, (H, H), dtype=jnp.float32),
        'bk': 0.01 * jax.random.normal(kbk, (H,), dtype=jnp.float32),
        'gk': jnp.ones((H,), dtype=jnp.float32),
        'betak': jnp.zeros((H,), dtype=jnp.float32),
    }

    w_packed, vec_packed = pack_params(params, H)   # hoisted, once per model

    fwd = jax.jit(attention_forward)
    out = fwd(query, key, value, query_mask, key_mask, w_packed, vec_packed)
    out = jax.block_until_ready(out)

    ref = _reference_forward(query, key, value, query_mask, key_mask, params)
    assert out.shape == (Q, B, H) and out.dtype == jnp.float32
    # bf16 MXU inputs + approx reciprocal => looser tolerance than pure f32;
    # semantic bugs (masking / softmax / layout) produce O(1) differences.
    assert jnp.allclose(out, ref, rtol=5e-2, atol=5e-2), \
        "mismatch vs pure-JAX reference"

    print("KERNEL_OK")
</pallas_src>

<mosaic_0001>
module attributes {stable_mosaic.version = 11 : i64} {
  func.func @_attention_kernel(%arg0: memref<16x32xf32, #tpu.memory_space<vmem>>, %arg1: memref<16x32xf32, #tpu.memory_space<vmem>>, %arg2: memref<16x32xf32, #tpu.memory_space<vmem>>, %arg3: memref<16x1xi32, #tpu.memory_space<vmem>>, %arg4: memref<1x16xi32, #tpu.memory_space<vmem>>, %arg5: memref<2x32x32xbf16, #tpu.memory_space<vmem>>, %arg6: memref<6x32xf32, #tpu.memory_space<vmem>>, %arg7: memref<16x32xf32, #tpu.memory_space<vmem>>) attributes {dimension_semantics = [], scalar_prefetch = 0 : i64, scratch_operands = 0 : i64, tpu.core_type = #tpu.core_type<tc>} {
    %c0 = arith.constant 0 : index
    %c0_0 = arith.constant 0 : index
    %0 = vector.load %arg6[%c0, %c0_0] : memref<6x32xf32, #tpu.memory_space<vmem>>, vector<6x32xf32>
    %c0_1 = arith.constant 0 : index
    %c0_2 = arith.constant 0 : index
    %c0_3 = arith.constant 0 : index
    %1 = vector.load %arg5[%c0_1, %c0_2, %c0_3] : memref<2x32x32xbf16, #tpu.memory_space<vmem>>, vector<1x32x32xbf16>
    %2 = vector.shape_cast %1 : vector<1x32x32xbf16> to vector<32x32xbf16>
    %3 = vector.extract_strided_slice %0 {offsets = [0, 0], sizes = [1, 32], strides = [1, 1]} : vector<6x32xf32> to vector<1x32xf32>
    %4 = vector.extract_strided_slice %0 {offsets = [1, 0], sizes = [1, 32], strides = [1, 1]} : vector<6x32xf32> to vector<1x32xf32>
    %5 = vector.extract_strided_slice %0 {offsets = [2, 0], sizes = [1, 32], strides = [1, 1]} : vector<6x32xf32> to vector<1x32xf32>
    %c0_4 = arith.constant 0 : index
    %c0_5 = arith.constant 0 : index
    %6 = vector.load %arg0[%c0_4, %c0_5] : memref<16x32xf32, #tpu.memory_space<vmem>>, vector<16x32xf32>
    %7 = arith.truncf %6 : vector<16x32xf32> to vector<16x32xbf16>
    %cst = arith.constant dense<0.000000e+00> : vector<16x32xf32>
    %8 = tpu.matmul %7, %2, %cst {dimension_numbers = #tpu.dot_dimension_numbers<[1], [0], [0], [1], [0, 0, 1, 1], [], []>} : vector<16x32xbf16>, vector<32x32xbf16>, vector<16x32xf32> -> vector<16x32xf32>
    %9 = vector.broadcast %3 : vector<1x32xf32> to vector<16x32xf32>
    %10 = arith.addf %8, %9 : vector<16x32xf32>
    %cst_6 = arith.constant dense<0.000000e+00> : vector<16xf32>
    %11 = vector.multi_reduction <add>, %10, %cst_6 [1] : vector<16x32xf32> to vector<16xf32>
    %12 = vector.shape_cast %11 : vector<16xf32> to vector<16x1xf32>
    %cst_7 = arith.constant 3.200000e+01 : f32
    %13 = vector.broadcast %cst_7 : f32 to vector<16x1xf32>
    %14 = arith.divf %12, %13 : vector<16x1xf32>
    %15 = vector.broadcast %14 : vector<16x1xf32> to vector<16x32xf32>
    %16 = arith.subf %10, %15 : vector<16x32xf32>
    %17 = arith.mulf %16, %16 : vector<16x32xf32>
    %cst_8 = arith.constant dense<0.000000e+00> : vector<16xf32>
    %18 = vector.multi_reduction <add>, %17, %cst_8 [1] : vector<16x32xf32> to vector<16xf32>
    %19 = vector.shape_cast %18 : vector<16xf32> to vector<16x1xf32>
    %cst_9 = arith.constant 3.200000e+01 : f32
    %20 = vector.broadcast %cst_9 : f32 to vector<16x1xf32>
    %21 = arith.divf %19, %20 : vector<16x1xf32>
    %cst_10 = arith.constant 9.99999974E-6 : f32
    %22 = vector.broadcast %cst_10 : f32 to vector<16x1xf32>
    %23 = arith.addf %21, %22 : vector<16x1xf32>
    %24 = math.rsqrt %23 : vector<16x1xf32>
    %25 = vector.broadcast %24 : vector<16x1xf32> to vector<16x32xf32>
    %26 = arith.mulf %16, %25 : vector<16x32xf32>
    %27 = vector.broadcast %4 : vector<1x32xf32> to vector<16x32xf32>
    %28 = arith.mulf %26, %27 : vector<16x32xf32>
    %29 = vector.broadcast %5 : vector<1x32xf32> to vector<16x32xf32>
    %30 = arith.addf %28, %29 : vector<16x32xf32>
    %c1 = arith.constant 1 : index
    %c0_11 = arith.constant 0 : index
    %c0_12 = arith.constant 0 : index
    %31 = vector.load %arg5[%c1, %c0_11, %c0_12] : memref<2x32x32xbf16, #tpu.memory_space<vmem>>, vector<1x32x32xbf16>
    %32 = vector.shape_cast %31 : vector<1x32x32xbf16> to vector<32x32xbf16>
    %33 = vector.extract_strided_slice %0 {offsets = [3, 0], sizes = [1, 32], strides = [1, 1]} : vector<6x32xf32> to vector<1x32xf32>
    %34 = vector.extract_strided_slice %0 {offsets = [4, 0], sizes = [1, 32], strides = [1, 1]} : vector<6x32xf32> to vector<1x32xf32>
    %35 = vector.extract_strided_slice %0 {offsets = [5, 0], sizes = [1, 32], strides = [1, 1]} : vector<6x32xf32> to vector<1x32xf32>
    %c0_13 = arith.constant 0 : index
    %c0_14 = arith.constant 0 : index
    %36 = vector.load %arg1[%c0_13, %c0_14] : memref<16x32xf32, #tpu.memory_space<vmem>>, vector<16x32xf32>
    %37 = arith.truncf %36 : vector<16x32xf32> to vector<16x32xbf16>
    %cst_15 = arith.constant dense<0.000000e+00> : vector<16x32xf32>
    %38 = tpu.matmul %37, %32, %cst_15 {dimension_numbers = #tpu.dot_dimension_numbers<[1], [0], [0], [1], [0, 0, 1, 1], [], []>} : vector<16x32xbf16>, vector<32x32xbf16>, vector<16x32xf32> -> vector<16x32xf32>
    %39 = vector.broadcast %33 : vector<1x32xf32> to vector<16x32xf32>
    %40 = arith.addf %38, %39 : vector<16x32xf32>
    %cst_16 = arith.constant dense<0.000000e+00> : vector<16xf32>
    %41 = vector.multi_reduction <add>, %40, %cst_16 [1] : vector<16x32xf32> to vector<16xf32>
    %42 = vector.shape_cast %41 : vector<16xf32> to vector<16x1xf32>
    %cst_17 = arith.constant 3.200000e+01 : f32
    %43 = vector.broadcast %cst_17 : f32 to vector<16x1xf32>
    %44 = arith.divf %42, %43 : vector<16x1xf32>
    %45 = vector.broadcast %44 : vector<16x1xf32> to vector<16x32xf32>
    %46 = arith.subf %40, %45 : vector<16x32xf32>
    %47 = arith.mulf %46, %46 : vector<16x32xf32>
    %cst_18 = arith.constant dense<0.000000e+00> : vector<16xf32>
    %48 = vector.multi_reduction <add>, %47, %cst_18 [1] : vector<16x32xf32> to vector<16xf32>
    %49 = vector.shape_cast %48 : vector<16xf32> to vector<16x1xf32>
    %cst_19 = arith.constant 3.200000e+01 : f32
    %50 = vector.broadcast %cst_19 : f32 to vector<16x1xf32>
    %51 = arith.divf %49, %50 : vector<16x1xf32>
    %cst_20 = arith.constant 9.99999974E-6 : f32
    %52 = vector.broadcast %cst_20 : f32 to vector<16x1xf32>
    %53 = arith.addf %51, %52 : vector<16x1xf32>
    %54 = math.rsqrt %53 : vector<16x1xf32>
    %55 = vector.broadcast %54 : vector<16x1xf32> to vector<16x32xf32>
    %56 = arith.mulf %46, %55 : vector<16x32xf32>
    %57 = vector.broadcast %34 : vector<1x32xf32> to vector<16x32xf32>
    %58 = arith.mulf %56, %57 : vector<16x32xf32>
    %59 = vector.broadcast %35 : vector<1x32xf32> to vector<16x32xf32>
    %60 = arith.addf %58, %59 : vector<16x32xf32>
    %61 = arith.truncf %30 : vector<16x32xf32> to vector<16x32xbf16>
    %62 = arith.truncf %60 : vector<16x32xf32> to vector<16x32xbf16>
    %cst_21 = arith.constant dense<0.000000e+00> : vector<16x16xf32>
    %63 = tpu.matmul %61, %62, %cst_21 {dimension_numbers = #tpu.dot_dimension_numbers<[1], [1], [0], [0], [0, 0, 1, 0], [], []>} : vector<16x32xbf16>, vector<16x32xbf16>, vector<16x16xf32> -> vector<16x16xf32>
    %c0_22 = arith.constant 0 : index
    %c0_23 = arith.constant 0 : index
    %64 = vector.load %arg3[%c0_22, %c0_23] : memref<16x1xi32, #tpu.memory_space<vmem>>, vector<16x1xi32>
    %c0_24 = arith.constant 0 : index
    %c0_25 = arith.constant 0 : index
    %65 = vector.load %arg4[%c0_24, %c0_25] : memref<1x16xi32, #tpu.memory_space<vmem>>, vector<1x16xi32>
    %66 = vector.broadcast %64 : vector<16x1xi32> to vector<16x16xi32>
    %67 = vector.broadcast %65 : vector<1x16xi32> to vector<16x16xi32>
    %68 = arith.cmpi ne, %66, %67 : vector<16x16xi32>
    %69 = vector.shape_cast %63 : vector<16x16xf32> to vector<1x16x16xf32>
    %cst_26 = arith.constant dense<0x7F800000> : vector<1xf32>
    %70 = vector.multi_reduction <minimumf>, %69, %cst_26 [1, 2] : vector<1x16x16xf32> to vector<1xf32>
    %71 = vector.shape_cast %70 : vector<1xf32> to vector<1x1x1xf32>
    %72 = vector.extract %71[0, 0, 0] : f32 from vector<1x1x1xf32>
    %73 = vector.broadcast %72 : f32 to vector<16x16xf32>
    %74 = arith.select %68, %73, %63 : vector<16x16xi1>, vector<16x16xf32>
    %cst_27 = arith.constant dense<0xFF800000> : vector<16xf32>
    %75 = vector.multi_reduction <maximumf>, %74, %cst_27 [1] : vector<16x16xf32> to vector<16xf32>
    %76 = vector.shape_cast %75 : vector<16xf32> to vector<16x1xf32>
    %77 = arith.addf %76, %76 : vector<16x1xf32>
    %78 = vector.broadcast %77 : vector<16x1xf32> to vector<16x16xf32>
    %79 = arith.subf %63, %78 : vector<16x16xf32>
    %80 = math.exp %79 : vector<16x16xf32>
    %cst_28 = arith.constant 0.000000e+00 : f32
    %81 = vector.broadcast %cst_28 : f32 to vector<16x16xf32>
    %82 = arith.select %68, %81, %80 : vector<16x16xi1>, vector<16x16xf32>
    %cst_29 = arith.constant dense<0.000000e+00> : vector<16xf32>
    %83 = vector.multi_reduction <add>, %82, %cst_29 [1] : vector<16x16xf32> to vector<16xf32>
    %84 = vector.shape_cast %83 : vector<16xf32> to vector<16x1xf32>
    %cst_30 = arith.constant 1.000000e-03 : f32
    %85 = vector.broadcast %cst_30 : f32 to vector<16x1xf32>
    %86 = arith.addf %84, %85 : vector<16x1xf32>
    %87 = tpu.reciprocal %86 {approx = true} : vector<16x1xf32> -> vector<16x1xf32>
    %88 = vector.broadcast %87 : vector<16x1xf32> to vector<16x16xf32>
    %89 = arith.mulf %82, %88 : vector<16x16xf32>
    %90 = arith.truncf %89 : vector<16x16xf32> to vector<16x16xbf16>
    %c0_31 = arith.constant 0 : index
    %c0_32 = arith.constant 0 : index
    %91 = vector.load %arg2[%c0_31, %c0_32] : memref<16x32xf32, #tpu.memory_space<vmem>>, vector<16x32xf32>
    %92 = arith.truncf %91 : vector<16x32xf32> to vector<16x32xbf16>
    %cst_33 = arith.constant dense<0.000000e+00> : vector<16x32xf32>
    %93 = tpu.matmul %90, %92, %cst_33 {dimension_numbers = #tpu.dot_dimension_numbers<[1], [0], [0], [1], [0, 0, 1, 1], [], []>} : vector<16x16xbf16>, vector<16x32xbf16>, vector<16x32xf32> -> vector<16x32xf32>
    %c0_34 = arith.constant 0 : index
    %c0_35 = arith.constant 0 : index
    %94 = vector.load %arg7[%c0_34, %c0_35] : memref<16x32xf32, #tpu.memory_space<vmem>>, vector<16x32xf32>
    tpu.vector_store %arg7[%c0_34, %c0_35], %93 {strides = array<i32>} : memref<16x32xf32, #tpu.memory_space<vmem>>, vector<16x32xf32>,
    return
  }
}

</mosaic_0001>

<bundles_post_ra>
// kernel: attention_forward.1
= control target key start
LH: loop header
LB: loop body
LE: loop exit
PB: predicated region body
PF: predicated region fallthrough
CT: control target
= control target key end

     0   :  { %12 = vsyncpa [#allocation3], 0  ;;  %s719_s0 = inlined_call_operand.vmem [shape: f32[16,32], index: 0, kind: input, shape index: {}]   ;;  %s720_s1 = inlined_call_operand.vmem [shape: f32[16,32], index: 1, kind: input, shape index: {}]   ;;  %s721_s2 = inlined_call_operand.hbm [shape: f32[16,32], index: 2, kind: input, shape index: {}]   ;;  %s722_s3 = inlined_call_operand.vmem [shape: s32[16,1], index: 3, kind: input, shape index: {}]   ;;  %s723_s4 = inlined_call_operand.vmem [shape: s32[1,16], index: 4, kind: input, shape index: {}]   ;;  %s724_s5 = inlined_call_operand.vmem [shape: bf16[2,32,32], index: 5, kind: input, shape index: {}]   ;;  %s725_s6 = inlined_call_operand.vmem [shape: f32[6,32], index: 6, kind: input, shape index: {}]   ;;  %s726_s7 = inlined_call_operand.hbm [shape: f32[16,32], index: 7, kind: output, shape index: {}]  }
   0x1   :  { %13 = vsyncpa [#allocation4], 0  ;;  %s561_s24 = smov [#allocation2]   ;;  %s513_s28 = scalar_lea.hbm %s721_s2, 256 }
   0x2   :  { %s23_s25 = sshll.u32 %s561_s24, 4  ;;  %p514_p0 = scmp.ne.s32.totalorder %s721_s2, %s513_s28  ;;  %s24_s25 = int_to_ptr.vmem [resolvable:$true] %s23_s25 }
   0x3   :  { %p517_p1 = scmp.lt.u32.totalorder %s513_s28, %s721_s2 }
   0x5   :  { %p519_p2 = pnand %p517_p1, %p514_p0 }
   0x7   :  { %522 = shalt.err (!%p519_p2)
}
   0x8   :  { %s523_s10 = scalar_lea.vmem %s24_s25, 256  ;;  %p528_p4 = scmp.lt.s32.totalorder %s24_s25, %s24_s25 }
   0x9   :  { %p524_p3 = scmp.ne.s32.totalorder %s24_s25, %s523_s10  ;;  %p529_p5 = scmp.lt.s32.totalorder %s523_s10, %s523_s10 }
   0xb   :  { %p530_p6 = por %p529_p5, %p528_p4 }
   0xd   :  { %p531_p7 = pnand %p530_p6, %p524_p3 }
   0xf   :  { %534 = shalt.err (!%p531_p7)
}
  0x10   :  { %s562_s11 = smov 128   ;;  %s563_s12 = smov 8  }
  0x11   :  { %29 = dma.hbm_to_vmem [thread:$0]  %s721_s2, 256, %s24_s25, [#allocation3], %s562_s11, %s562_s11, %s563_s12  }
  0x12   :  { %557 = dma.done.wait [#allocation3], 256  }
  0x13   :  { %558 = vsyncadd [#allocation3], 4294967040  ;;  %v564_v0 = vmov 0.0   ;;  %vm565_vm0 = vmmov 0   ;;  %v493_v1 = vld [vmem:[%s724_s5] sm:$0xff]   ;;  %v494_v2 = vld [vmem:[%s724_s5 + $0x10] sm:$0xff]   ;;  %v50_v11 = vlaneseq }
  0x14   :  { %454 = vmatprep.subr.bf16.mxu0 %v564_v0  ;;  %462 = vmatprep.subr.bf16.mxu1 %v564_v0  ;;  %v495_v3 = vld [vmem:[%s724_s5 + $0x8] sm:$0xff]   ;;  %v496_v4 = vld [vmem:[%s724_s5 + $0x18] sm:$0xff]   ;;  %v47_v5 = vld [vmem:[%s719_s0] sm:$0xff]  ;;  %vm66_vm1 = vcmask 261120   ;;  %vm320_vm2 = vcmask 130048  }
  0x15   :  { %458 = vmatprep.mubr.msk.bf16.mxu0 %vm565_vm0, %v564_v0  ;;  %466 = vmatprep.mubr.msk.bf16.mxu1 %vm565_vm0, %v564_v0  ;;  %v48_v6 = vld [vmem:[%s719_s0 + $0x8] sm:$0xff]  ;;  %v155_v7 = vld [vmem:[%s720_s1] sm:$0xff]  ;;  %v653_v12 = vshrl.u32 %v50_v11, 7 }
  0x16   :  { %455 = vmatpush3.bf16.msra.mxu0 %v493_v1  ;;  %463 = vmatpush3.bf16.msra.mxu1 %v494_v2  ;;  %v49_v8 = vpack.c.bf16 %v48_v6, %v47_v5  ;;  %v156_v9 = vld [vmem:[%s720_s1 + $0x8] sm:$0xff]  ;;  %v659_v14 = vld [vmem:[%s725_s6] sm:$0x3f] }
  0x17   :  { %456 = vmatprep.subr.bf16.mxu0 %v564_v0  ;;  %464 = vmatprep.subr.bf16.mxu1 %v564_v0  ;;  %v157_v10 = vpack.c.bf16 %v156_v9, %v155_v7  ;;  %v52_v13 = vsub.s32 0, %v653_v12  ;;  %v160_v15 = vsub.s32 3, %v653_v12  ;;  %v246_v2 = vsub.s32 4, %v653_v12 }
  0x18   :  { %v252_v6 = vsub.s32 5, %v653_v12 }
  0x19   :  { %v53_v16 = vrot.slane %v659_v14, %v52_v13  ;;  %v161_v17 = vrot.slane %v659_v14, %v160_v15  ;;  %v247_v5 = vrot.slane %v659_v14, %v246_v2 }
  0x1a   :  { %457 = vmatpush3.bf16.msra.mxu0 %v495_v3  ;;  %465 = vmatpush3.bf16.msra.mxu1 %v496_v4  ;;  %v253_v11 = vrot.slane %v659_v14, %v252_v6 }
  0x1b   :  { %470 = vmatprep.subr.bf16.mxu0 %v564_v0  ;;  %476 = vmatprep.subr.bf16.mxu1 %v564_v0 }
  0x1d   :  { %459 = vmatmul.mubr.msk.bf16.vlgmr.msra.gmra.mrb[0].mxu0 %vm66_vm1, %v49_v8  ;;  %467 = vmatmul.mubr.msk.bf16.vlgmr.msra.gmra.mrb[0].mxu1 %vm66_vm1, %v157_v10  ;;  %v140_v8 = vsub.s32 1, %v653_v12 }
  0x1e   :  { %472 = vmatprep.mubr.msk.bf16.mxu0 %vm565_vm0, %v564_v0  ;;  %478 = vmatprep.mubr.msk.bf16.mxu1 %vm565_vm0, %v564_v0 }
  0xf0   :  { %v104_v18 = vpop.f32.mrb[0].mxu0  ;;  %v211_v20 = vpop.f32.mrb[0].mxu1 }
  0xf1   :  { %v105_v19 = vadd.f32 %v104_v18, %v53_v16  ;;  %v460_v21 = vpop.f32.mrb[1].mxu0  ;;  %v212_v22 = vadd.f32 %v211_v20, %v161_v17  ;;  %v468_v23 = vpop.f32.mrb[1].mxu1 }
  0xf2   :  { %v107_v24 = vpop.f32.mrb[2].mxu0  ;;  %v214_v25 = vpop.f32.mrb[2].mxu1 }
  0xf3   :  { %v108_v26 = vadd.f32 %v107_v24, %v53_v16  ;;  %v111_v27 = vsel %vm66_vm1, %v105_v19, 0.0  ;;  %v461_v28 = vpop.f32.mrb[3].mxu0  ;;  %v215_v29 = vadd.f32 %v214_v25, %v161_v17  ;;  %v469_v30 = vpop.f32.mrb[3].mxu1  ;;  %v218_v31 = vsel %vm66_vm1, %v212_v22, 0.0 }
  0xf4   :  { %112 = vadd.xlane.f32.xlu1 %v111_v27  ;;  %219 = vadd.xlane.f32.xlu0 %v218_v31  ;;  %v141_v17 = vrot.slane %v659_v14, %v140_v8  ;;  %v305_v31 = vld [vmem:[%s722_s3] sm:$0xff] }
  0xf5   :  { %v114_v32 = vsel %vm66_vm1, %v108_v26, 0.0  ;;  %v221_v33 = vsel %vm66_vm1, %v215_v29, 0.0 }
  0xf8   :  { %115 = vadd.xlane.f32.xlu1 %v114_v32  ;;  %222 = vadd.xlane.f32.xlu0 %v221_v33  ;;  %v566_v32 = vmov 0  }
  0xf9   :  { %492 = vset.pattern.permute.xlu0 %v566_v32  ;;  %491 = vset.pattern.permute.xlu1 %v566_v32 }
 0x181   :  { %v113_v34 = vpop.xlane.xlu1 %112  ;;  %v220_v35 = vpop.xlane.xlu0 %219 }
 0x182   :  { %v118_v36 = vmul.f32 0.03125, %v113_v34  ;;  %v224_v37 = vmul.f32 0.03125, %v220_v35 }
 0x184   :  { %v226_v38 = vsub.f32 %v212_v22, %v224_v37  ;;  %v120_v39 = vsub.f32 %v105_v19, %v118_v36  ;;  %v146_v22 = vsub.s32 2, %v653_v12 }
 0x185   :  { %v116_v40 = vpop.xlane.xlu1 %115  ;;  %v223_v41 = vpop.xlane.xlu0 %222 }
 0x186   :  { %v119_v42 = vmul.f32 0.03125, %v116_v40  ;;  %v225_v43 = vmul.f32 0.03125, %v223_v41  ;;  %v228_v44 = vmul.f32 %v226_v38, %v226_v38  ;;  %v122_v48 = vmul.f32 %v120_v39, %v120_v39 }
 0x187   :  { %v147_v27 = vrot.slane %v659_v14, %v146_v22 }
 0x188   :  { %v227_v45 = vsub.f32 %v215_v29, %v225_v43  ;;  %v121_v46 = vsub.f32 %v108_v26, %v119_v42  ;;  %v230_v47 = vsel %vm66_vm1, %v228_v44, 0.0  ;;  %v124_v51 = vsel %vm66_vm1, %v122_v48, 0.0 }
 0x189   :  { %231 = vadd.xlane.f32.xlu0 %v230_v47 }
 0x18a   :  { %v229_v49 = vmul.f32 %v227_v45, %v227_v45  ;;  %v123_v52 = vmul.f32 %v121_v46, %v121_v46 }
 0x18c   :  { %v233_v50 = vsel %vm66_vm1, %v229_v49, 0.0  ;;  %v127_v53 = vsel %vm66_vm1, %v123_v52, 0.0 }
 0x18d   :  { %234 = vadd.xlane.f32.xlu1 %v233_v50  ;;  %125 = vadd.xlane.f32.xlu0 %v124_v51 }
 0x191   :  { %128 = vadd.xlane.f32.xlu1 %v127_v53 }
 0x1a2   :  { %309 = vperm.xlu1 %491, %v305_v31  }
 0x216   :  { %v232_v54 = vpop.xlane.xlu0 %231 }
 0x217   :  { %v236_v55 = vmul.f32 0.03125, %v232_v54 }
 0x219   :  { %v238_v56 = vadd.f32 1e-05, %v236_v55 }
 0x21a   :  { %v126_v57 = vpop.xlane.xlu0 %125  ;;  %v235_v58 = vpop.xlane.xlu1 %234 }
 0x21b   :  { %497 = vrsqrt.f32 %v238_v56  ;;  %v130_v59 = vmul.f32 0.03125, %v126_v57  ;;  %v237_v60 = vmul.f32 0.03125, %v235_v58 }
 0x21d   :  { %v239_v61 = vadd.f32 1e-05, %v237_v60  ;;  %v132_v62 = vadd.f32 1e-05, %v130_v59 }
 0x21e   :  { %v129_v63 = vpop.xlane.xlu1 %128 }
 0x21f   :  { %v131_v0 = vmul.f32 0.03125, %v129_v63  ;;  %499 = vrsqrt.f32 %v239_v61 }
 0x220   :  { %501 = vrsqrt.f32 %v132_v62 }
 0x221   :  { %v133_v1 = vadd.f32 1e-05, %v131_v0 }
 0x222   :  { %v310_v48 = vpop.permute.xlu1 %309 }
 0x223   :  { %503 = vrsqrt.f32 %v133_v1 }
 0x225   :  { %v498_v3 = vpop.eup %497 }
 0x226   :  { %v242_v4 = vmul.f32 %v498_v3, %v226_v38  ;;  %v306_v38 = vld [vmem:[%s722_s3 + $0x8] sm:$0xff]  ;;  %s567_s3 = smov [#allocation5]  }
 0x228   :  { %v248_v10 = vmul.f32 %v247_v5, %v242_v4  ;;  %v365_v4 = vld [vmem:[#allocation2] sm:$0xff] }
 0x229   :  { %v500_v7 = vpop.eup %499 }
 0x22a   :  { %v243_v9 = vmul.f32 %v500_v7, %v227_v45  ;;  %v502_v13 = vpop.eup %501  ;;  %v254_v20 = vadd.f32 %v253_v11, %v248_v10 }
 0x22b   :  { %v136_v19 = vmul.f32 %v502_v13, %v120_v39 }
 0x22c   :  { %v249_v16 = vmul.f32 %v247_v5, %v243_v9  ;;  %v366_v5 = vld [vmem:[#allocation2 + $0x8] sm:$0xff] }
 0x22d   :  { %v504_v15 = vpop.eup %503  ;;  %v142_v25 = vmul.f32 %v141_v17, %v136_v19  ;;  %v367_v6 = vpack.c.bf16 %v366_v5, %v365_v4 }
 0x22e   :  { %v137_v18 = vmul.f32 %v504_v15, %v121_v46  ;;  %v255_v21 = vadd.f32 %v253_v11, %v249_v16  ;;  %v442_v46 = vld [vmem:[%s723_s4] ss:$0 sm:$0xff]  ;;  %s419_s4 = sshll.u32 %s567_s3, 4  ;;  %s420_s4 = int_to_ptr.vmem [resolvable:$true] %s419_s4 }
 0x22f   :  { %v148_v29 = vadd.f32 %v147_v27, %v142_v25  ;;  %vm318_vm4 = vcmp.ne.s32.totalorder %v310_v48, %v442_v46  ;;  %477 = vmatpush3.bf16.msra.mxu1 %v367_v6  ;;  %s535_s14 = scalar_lea.vmem %s420_s4, 256  ;;  %p540_p9 = scmp.lt.s32.totalorder %s420_s4, %s420_s4 }
 0x230   :  { %v143_v23 = vmul.f32 %v141_v17, %v137_v18  ;;  %v257_v24 = vpack.c.bf16 %v255_v21, %v254_v20  ;;  %p536_p8 = scmp.ne.s32.totalorder %s420_s4, %s535_s14  ;;  %p541_p10 = scmp.lt.s32.totalorder %s535_s14, %s535_s14 }
 0x232   :  { %v262_v26 = vsel %vm66_vm1, %v257_v24, 0  ;;  %v149_v28 = vadd.f32 %v147_v27, %v143_v23  ;;  %p542_p11 = por %p541_p10, %p540_p9 }
 0x233   :  { %471 = vmatpush3.bf16.xpose.msra.mxu0 %v262_v26 }
 0x234   :  { %v256_v30 = vpack.c.bf16 %v149_v28, %v148_v29  ;;  %p543_p12 = pnand %p542_p11, %p536_p8 }
 0x23a   :  { %473 = vmatmul.mubr.msk.bf16.vlgmr.msra.gmra.mrb[4].mxu0 %vm66_vm1, %v256_v30 }
 0x30d   :  { %v298_v12 = vpop.f32.mrb[4].mxu0 }
 0x30e   :  { %v474_v33 = vpop.f32.mrb[5].mxu0  ;;  %v321_v14 = vsel %vm320_vm2, %v298_v12, inf }
 0x30f   :  { %v301_v34 = vpop.f32.mrb[6].mxu0 }
 0x310   :  { %v475_v35 = vpop.f32.mrb[7].mxu0  ;;  %v322_v36 = vsel %vm320_vm2, %v301_v34, inf }
 0x311   :  { %v323_v37 = vmin.f32 %v321_v14, %v322_v36 }
 0x313   :  { %324 = vmin.xlane.f32.xlu0 %v323_v37 }
 0x329   :  { %312 = vperm.xlu0 %492, %v306_v38  }
 0x3a0   :  { %v325_v39 = vpop.xlane.xlu0 %324 }
 0x3a1   :  { %v326_v40 = vrot.slane %v325_v39, 4 }
 0x3a3   :  { %v327_v41 = vmin.f32 %v325_v39, %v326_v40 }
 0x3a5   :  { %v328_v42 = vrot.slane %v327_v41, 2 }
 0x3a7   :  { %v329_v43 = vmin.f32 %v327_v41, %v328_v42 }
 0x3a8   :  { %v313_v47 = vpop.permute.xlu0 %312 }
 0x3a9   :  { %v330_v44 = vrot.slane %v329_v43, 1  ;;  %vm319_vm3 = vcmp.ne.s32.totalorder %v313_v47, %v442_v46 }
 0x3ab   :  { %v331_v45 = vmin.f32 %v329_v43, %v330_v44 }
 0x3ad   :  { %482 = vpush %v331_v45 }
 0x3de   :  { %s483_s13 = spop %482 }
 0x3df   :  { %v333_v49 = vstv %s483_s13 }
 0x3e0   :  { %v335_v50 = vsel %vm319_vm3, %v333_v49, %v301_v34  ;;  %v334_v51 = vsel %vm318_vm4, %v333_v49, %v298_v12 }
 0x3e1   :  { %v339_v52 = vsel %vm320_vm2, %v335_v50, -inf  ;;  %v336_v53 = vsel %vm320_vm2, %v334_v51, -inf }
 0x3e2   :  { %340 = vmax.xlane.f32.xlu0 %v339_v52  ;;  %337 = vmax.xlane.f32.xlu1 %v336_v53 }
 0x46f   :  { %v341_v54 = vpop.xlane.xlu0 %340  ;;  %v338_v55 = vpop.xlane.xlu1 %337 }
 0x470   :  { %v343_v56 = vadd.f32 %v341_v54, %v341_v54  ;;  %v342_v57 = vadd.f32 %v338_v55, %v338_v55 }
 0x472   :  { %v345_v58 = vsub.f32 %v301_v34, %v343_v56  ;;  %v344_v59 = vsub.f32 %v298_v12, %v342_v57 }
 0x474   :  { %v348_v60 = vmul.f32 1.442695, %v345_v58  ;;  %v346_v61 = vmul.f32 1.442695, %v344_v59 }
 0x476   :  { %505 = vpow2.f32 %v348_v60 }
 0x477   :  { %507 = vpow2.f32 %v346_v61 }
 0x480   :  { %v506_v62 = vpop.eup %505 }
 0x481   :  { %v508_v63 = vpop.eup %507  ;;  %v351_v2 = vsel %vm319_vm3, 0.0, %v506_v62 }
 0x482   :  { %v350_v0 = vsel %vm318_vm4, 0.0, %v508_v63  ;;  %v355_v3 = vsel %vm320_vm2, %v351_v2, 0.0 }
 0x483   :  { %v352_v1 = vsel %vm320_vm2, %v350_v0, 0.0 }
 0x484   :  { %353 = vadd.xlane.f32.xlu1 %v352_v1 }
 0x488   :  { %356 = vadd.xlane.f32.xlu1 %v355_v3 }
 0x511   :  { %v354_v7 = vpop.xlane.xlu1 %353 }
 0x512   :  { %v358_v8 = vadd.f32 0.001, %v354_v7 }
 0x514   :  { %509 = vrcp.f32 %v358_v8 }
 0x515   :  { %v357_v9 = vpop.xlane.xlu1 %356 }
 0x516   :  { %v359_v10 = vadd.f32 0.001, %v357_v9 }
 0x518   :  { %511 = vrcp.f32 %v359_v10 }
 0x51e   :  { %v510_v11 = vpop.eup %509 }
 0x51f   :  { %v362_v15 = vmul.f32 %v510_v11, %v350_v0 }
 0x522   :  { %v512_v13 = vpop.eup %511 }
 0x523   :  { %v363_v16 = vmul.f32 %v512_v13, %v351_v2 }
 0x525   :  { %v364_v17 = vpack.c.bf16 %v363_v16, %v362_v15 }
 0x527   :  { %479 = vmatmul.mubr.msk.bf16.vlgmr.msra.gmra.mrb[4].mxu1 %vm320_vm2, %v364_v17 }
 0x5fa   :  { %v405_v18 = vpop.f32.mrb[4].mxu1 }
 0x5fb   :  { %412 = vst.msk [vmem:[#allocation5] sm:$0xff] %vm66_vm1, %v405_v18  ;;  %v480_v19 = vpop.f32.mrb[5].mxu1 }
 0x5fc   :  { %v408_v20 = vpop.f32.mrb[6].mxu1 }
 0x5fd   :  { %413 = vst.msk [vmem:[#allocation5 + $0x8] sm:$0xff] %vm66_vm1, %v408_v20  ;;  %v481_v21 = vpop.f32.mrb[7].mxu1 }
 0x5fe   :  { %546 = shalt.err (!%p543_p12)
}
 0x5ff   :  { %s547_s17 = scalar_lea.hbm %s726_s7, 256 }
 0x600   :  { %p548_p13 = scmp.ne.s32.totalorder %s726_s7, %s547_s17  ;;  %p551_p0 = scmp.lt.u32.totalorder %s547_s17, %s726_s7 }
 0x602   :  { %p553_p1 = pnand %p551_p0, %p548_p13 }
 0x604   :  { %556 = shalt.err (!%p553_p1)
}
 0x605   :  { %425 = dma.vmem_to_hbm [thread:$0]  %s420_s4, 256, %s726_s7, [#allocation4], %s562_s11, %s562_s11, %s563_s12  }
 0x606   :  { %559 = dma.done.wait [#allocation4], 256  }
 0x607   :  { %560 = vsyncadd [#allocation4], 4294967040 }
 0x608   :  { %429 = vsyncpa [#allocation3], 1 }
 0x609   :  { %430 = vsyncpa [#allocation4], 1 }

</bundles_post_ra>
